<compile_context>
chip_gen: v5e
topology: v5e:2x2
jax: 0.10.0
libtpu: 0.0.40
codegen_flags: <defaults>
</compile_context>

<pallas_src>
import jax
import jax.numpy as jnp
from jax import lax
from jax.experimental import pallas as pl
from jax.experimental.pallas import tpu as pltpu


def _round_up(n, m):
    return ((n + m - 1) // m) * m


def _fused_linear_kernel(x_ref, w_ref, b_ref, o_ref):
    # x_ref: (TB, F1); w_ref: (F1, C); b_ref: (1, C); o_ref: (TB, C)
    o_ref[...] = (
        jnp.dot(x_ref[...], w_ref[...], preferred_element_type=jnp.float32)
        + b_ref[...]
    ).astype(o_ref.dtype)


def make_max_corr_net_params(w1, b1, w2, b2):
    """Fuse the two linear layers once, at parameter-setup time.

    w1: (F2, F1); b1: (F2,); w2: (C, F2); b2: (C,)  -- PyTorch layouts.
    Returns (w_fused (F1, C), b_fused (1, C)).
    """
    # w_fused = w1.T @ w2.T  -> (F1, C), built without emitting transpose ops.
    w_fused = lax.dot_general(
        w1, w2, dimension_numbers=(((0,), (1,)), ((), ())),
        preferred_element_type=jnp.float32)                               # (F1, C)
    b_fused = (jnp.dot(w2, b1, preferred_element_type=jnp.float32) + b2)  # (C,)
    return w_fused, b_fused.reshape(1, -1)


def max_corr_net_forward(x, w_fused, b_fused, *, block_b=8192):
    """Forward of max_corr_net with pre-fused parameters.

    x: (B, F1); w_fused: (F1, C); b_fused: (1, C). Returns (B, C).
    """
    B, F1 = x.shape
    C = w_fused.shape[1]

    # ---- Batch tiling ----------------------------------------------------------
    # Big tiles amortize the ~0.35 us per-grid-step cost; keep an even number of
    # steps when tiling is needed so v7x's two TensorCores both get work.
    if B <= block_b:
        n_steps = 1
        tb = _round_up(B, 8)
    else:
        n_steps = pl.cdiv(B, block_b)
        if n_steps % 2 == 1:
            n_steps += 1
        tb = _round_up(pl.cdiv(B, n_steps), 8)
        n_steps = pl.cdiv(B, tb)
    grid = (n_steps,)

    flops = 2 * B * F1 * C + B * C
    bytes_accessed = 4 * (B * F1 + F1 * C + C + B * C)

    out = pl.pallas_call(
        _fused_linear_kernel,
        out_shape=jax.ShapeDtypeStruct((B, C), x.dtype),
        grid_spec=pltpu.PrefetchScalarGridSpec(
            num_scalar_prefetch=0,
            grid=grid,
            in_specs=[
                pl.BlockSpec((tb, F1), lambda i: (i, 0)),  # x: pipelined over batch
                pl.BlockSpec((F1, C), lambda i: (0, 0)),   # fused W: resident
                pl.BlockSpec((1, C), lambda i: (0, 0)),    # fused b: resident
            ],
            out_specs=pl.BlockSpec((tb, C), lambda i: (i, 0)),
        ),
        compiler_params=pltpu.CompilerParams(
            dimension_semantics=("parallel",),             # 2x on v7x dual-TC
        ),
        cost_estimate=pl.CostEstimate(
            flops=flops, transcendentals=0, bytes_accessed=bytes_accessed),
    )(x, w_fused, b_fused)

    return out


if __name__ == "__main__":
    # Small shapes consistent with the module's forward: x is (batch, num_features_1).
    batch = 8
    num_features_1 = 16
    num_features_2 = 32
    num_classes = 8

    key = jax.random.PRNGKey(0)
    kx, kw1, kb1, kw2, kb2 = jax.random.split(key, 5)

    x = jax.random.normal(kx, (batch, num_features_1), dtype=jnp.float32)
    # Deterministic parameter init (mimicking nn.Linear's uniform fan-in scaling).
    bound1 = 1.0 / jnp.sqrt(num_features_1)
    w1 = jax.random.uniform(kw1, (num_features_2, num_features_1),
                            minval=-bound1, maxval=bound1, dtype=jnp.float32)
    b1 = jax.random.uniform(kb1, (num_features_2,),
                            minval=-bound1, maxval=bound1, dtype=jnp.float32)
    bound2 = 1.0 / jnp.sqrt(num_features_2)
    w2 = jax.random.uniform(kw2, (num_classes, num_features_2),
                            minval=-bound2, maxval=bound2, dtype=jnp.float32)
    b2 = jax.random.uniform(kb2, (num_classes,),
                            minval=-bound2, maxval=bound2, dtype=jnp.float32)

    # One-time parameter fusion (hoisted out of the per-call forward path).
    w_fused, b_fused = make_max_corr_net_params(w1, b1, w2, b2)
    w_fused = jax.block_until_ready(w_fused)
    b_fused = jax.block_until_ready(b_fused)

    out = max_corr_net_forward(x, w_fused, b_fused)
    out = jax.block_until_ready(out)

    # Reference check in plain JAX (same math as PyTorch forward, unfused).
    ref = (x @ w1.T + b1) @ w2.T + b2
    assert out.shape == (batch, num_classes)
    assert jnp.allclose(out, ref, atol=1e-5, rtol=1e-5)

    print("KERNEL_OK")
</pallas_src>

<mosaic_0001>
module attributes {stable_mosaic.version = 11 : i64} {
  func.func @_fused_linear_kernel(%arg0: i32, %arg1: memref<8x16xf32, #tpu.memory_space<vmem>>, %arg2: memref<16x8xf32, #tpu.memory_space<vmem>>, %arg3: memref<1x8xf32, #tpu.memory_space<vmem>>, %arg4: memref<8x8xf32, #tpu.memory_space<vmem>>) attributes {dimension_semantics = [#tpu.dimension_semantics<parallel>], iteration_bounds = array<i64: 1>, scalar_prefetch = 0 : i64, scratch_operands = 0 : i64, tpu.core_type = #tpu.core_type<tc>, window_params = [{transform_indices = @transform_0, window_bounds = array<i64: 8, 16>}, {pipeline_mode = #tpu.pipeline_mode<synchronous>, transform_indices = @transform_1, window_bounds = array<i64: 16, 8>}, {pipeline_mode = #tpu.pipeline_mode<synchronous>, transform_indices = @transform_2, window_bounds = array<i64: 1, 8>}, {transform_indices = @transform_3, window_bounds = array<i64: 8, 8>}]} {
    %c0 = arith.constant 0 : index
    %c0_0 = arith.constant 0 : index
    %0 = vector.load %arg1[%c0, %c0_0] : memref<8x16xf32, #tpu.memory_space<vmem>>, vector<8x16xf32>
    %c0_1 = arith.constant 0 : index
    %c0_2 = arith.constant 0 : index
    %1 = vector.load %arg2[%c0_1, %c0_2] : memref<16x8xf32, #tpu.memory_space<vmem>>, vector<16x8xf32>
    %cst = arith.constant dense<0.000000e+00> : vector<8x8xf32>
    %2 = tpu.matmul %0, %1, %cst {dimension_numbers = #tpu.dot_dimension_numbers<[1], [0], [0], [1], [0, 0, 1, 1], [], []>} : vector<8x16xf32>, vector<16x8xf32>, vector<8x8xf32> -> vector<8x8xf32>
    %c0_3 = arith.constant 0 : index
    %c0_4 = arith.constant 0 : index
    %3 = vector.load %arg3[%c0_3, %c0_4] : memref<1x8xf32, #tpu.memory_space<vmem>>, vector<1x8xf32>
    %4 = vector.broadcast %3 : vector<1x8xf32> to vector<8x8xf32>
    %5 = arith.addf %2, %4 : vector<8x8xf32>
    %c0_5 = arith.constant 0 : index
    %c0_6 = arith.constant 0 : index
    %6 = vector.load %arg4[%c0_5, %c0_6] : memref<8x8xf32, #tpu.memory_space<vmem>>, vector<8x8xf32>
    tpu.vector_store %arg4[%c0_5, %c0_6], %5 {strides = array<i32>} : memref<8x8xf32, #tpu.memory_space<vmem>>, vector<8x8xf32>,
    return
  }
  func.func @transform_0(%arg0: i32) -> (i32, i32) {
    %c0_i32 = arith.constant 0 : i32
    %c0_i32_0 = arith.constant 0 : i32
    return %arg0, %c0_i32 : i32, i32
  }
  func.func @transform_1(%arg0: i32) -> (i32, i32) {
    %c0_i32 = arith.constant 0 : i32
    %c0_i32_0 = arith.constant 0 : i32
    %c0_i32_1 = arith.constant 0 : i32
    return %c0_i32, %c0_i32_0 : i32, i32
  }
  func.func @transform_2(%arg0: i32) -> (i32, i32) {
    %c0_i32 = arith.constant 0 : i32
    %c0_i32_0 = arith.constant 0 : i32
    %c0_i32_1 = arith.constant 0 : i32
    return %c0_i32, %c0_i32_0 : i32, i32
  }
  func.func @transform_3(%arg0: i32) -> (i32, i32) {
    %c0_i32 = arith.constant 0 : i32
    %c0_i32_0 = arith.constant 0 : i32
    return %arg0, %c0_i32 : i32, i32
  }
}

</mosaic_0001>

<bundles_post_ra>
// kernel: tpu_custom_call.1
= control target key start
LH: loop header
LB: loop body
LE: loop exit
PB: predicated region body
PF: predicated region fallthrough
CT: control target
= control target key end

     0   :  { %vm22_vm0 = vcmask 130048   ;;  %s129_s0 = inlined_call_operand.vmem [shape: f32[8,16], index: 0, kind: input, shape index: {}]   ;;  %s130_s1 = inlined_call_operand.vmem [shape: f32[16,8], index: 1, kind: input, shape index: {}]   ;;  %s131_s2 = inlined_call_operand.vmem [shape: f32[1,8], index: 2, kind: input, shape index: {}]   ;;  %s132_s3 = inlined_call_operand.hbm [shape: f32[8,8], index: 3, kind: output, shape index: {}]  }
   0x1   :  { %v17_v0 = vld [vmem:[%s130_s1 + $0x8] sm:$0xff]  ;;  %v16_v1 = vld [vmem:[%s130_s1] sm:$0xff] }
   0x2   :  { %40 = vmatpush.msra.mxu0 %v17_v0  ;;  %v15_v2 = vld [vmem:[%s129_s0] sm:$0xff] }
   0x3   :  { %8 = vsyncpa [#allocation3], 0  ;;  %v66_v3 = vld [vmem:[%s131_s2] ss:$0 sm:$0xff]  ;;  %s93_s20 = smov [#allocation2]   ;;  %s55_s24 = sshll.u32 %s132_s3, 4  ;;  %s56_s24 = int_to_ptr.hbm [resolvable:$true] %s55_s24 }
   0x4   :  { %41 = vmatpush.msra.mxu0 %v16_v1  ;;  %s53_s21 = sshll.u32 %s93_s20, 4  ;;  %vm46_vm1 = vcmask 64512   ;;  %s54_s21 = int_to_ptr.vmem [resolvable:$true] %s53_s21 }
   0x5   :  { %64 = vmatmul.msk.f32.vlgmr.msra.gmra.mxu0 %vm22_vm0, %v15_v2 }
  0x82   :  { %v43_v4 = vpop.f32.mrf.mxu0 }
  0x83   :  { %v44_v5 = vadd.f32 %v66_v3, %v43_v4 }
  0x85   :  { %47 = vst.msk [vmem:[#allocation2] sm:$0xff] %vm46_vm1, %v44_v5 }
  0x86   :  { %58 = dma.vmem_to_hbm [thread:$0]  %s54_s21, 128, %s56_s24, [#allocation3]  }
  0x87   :  { %91 = dma.done.wait [#allocation3], 128  }
  0x88   :  { %92 = vsyncadd [#allocation3], 4294967168 }
  0x89   :  { %63 = vsyncpa [#allocation3], 1 }

</bundles_post_ra>
